<compile_context>
chip_gen: v5e
topology: v5e:2x2
jax: 0.10.0
libtpu: 0.0.40
codegen_flags: <defaults>
</compile_context>

<pallas_src>
import numpy as np
import jax
import jax.numpy as jnp
from jax.experimental import pallas as pl
from jax.experimental.pallas import tpu as pltpu

# ---------------- problem sizes (implied by the module) ----------------
H, W = 2, 4                 # spatial grid: H*W must be 8 so that 16*H*W == 16*8
CIN, C1, C2 = 1, 3, 16
F0 = CIN * H * W            # 8   (input features, NCHW-flat)
F2 = C2 * H * W             # 128
L1, L2, L3 = 120, 84, 1
L1P, L2P = 128, 128         # lane-dense padded hidden widths
OUTP = 8                    # final output rows padded 1 -> 8 (sublane aligned)
TB_MAX = 2048               # batch-tile cap (batch sits on the lane axis)


# -------- exact dense lowering of 3x3 stride-1 pad-1 conv / avgpool --------
def conv3x3_same_as_matrix(w, b, h, wd):
    """w: (Cout, Cin, 3, 3), b: (Cout,). Returns A (Cin*h*wd, Cout*h*wd), bfull (Cout*h*wd,)
    such that out_flat = x_flat @ A + bfull reproduces nn.Conv2d(k=3,s=1,p=1) on NCHW-flat."""
    cout, cin = w.shape[0], w.shape[1]
    A = np.zeros((cin * h * wd, cout * h * wd), np.float32)
    for co in range(cout):
        for ci in range(cin):
            for oh in range(h):
                for ow in range(wd):
                    for kh in range(3):
                        for kw in range(3):
                            ih, iw = oh + kh - 1, ow + kw - 1
                            if 0 <= ih < h and 0 <= iw < wd:
                                A[ci * h * wd + ih * wd + iw,
                                  co * h * wd + oh * wd + ow] += w[co, ci, kh, kw]
    bfull = np.repeat(b.astype(np.float32), h * wd)
    return A, bfull


def avgpool3x3_same_as_matrix(c, h, wd):
    """nn.AvgPool2d(k=3,s=1,p=1) with count_include_pad=True (PyTorch default) as a
    (c*h*wd, c*h*wd) matrix acting on NCHW-flat features."""
    P = np.zeros((c * h * wd, c * h * wd), np.float32)
    for ch in range(c):
        for oh in range(h):
            for ow in range(wd):
                for kh in range(3):
                    for kw in range(3):
                        ih, iw = oh + kh - 1, ow + kw - 1
                        if 0 <= ih < h and 0 <= iw < wd:
                            P[ch * h * wd + ih * wd + iw,
                              ch * h * wd + oh * wd + ow] += 1.0 / 9.0
    return P


# ----------------------------- Pallas kernel -----------------------------
# Transposed dataflow: operands are (out_features, in_features) and activations are
# (features, batch_tile), so the batch dimension is the lane (last) axis everywhere.
def net_kernel(x_ref, m_ref, bm_ref, w2_ref, c2_ref, w3_ref, c3_ref, o_ref):
    f32, bf16 = jnp.float32, jnp.bfloat16
    # fused conv1+pool1+conv2+pool2+Linear1 (+bias) -> ReLU : (128,8)bf16 @ (8,TB)bf16
    h = jnp.dot(m_ref[...], x_ref[...], preferred_element_type=f32) + bm_ref[...]
    h = jnp.maximum(h, 0.0).astype(bf16)
    # Linear2 (+bias) -> ReLU : (128,128)bf16 @ (128,TB)bf16
    h = jnp.dot(w2_ref[...], h, preferred_element_type=f32) + c2_ref[...]
    h = jnp.maximum(h, 0.0).astype(bf16)
    # Linear3 (output rows padded to 8) + scalar bias from SMEM : (8,128)bf16 @ (128,TB)bf16
    o_ref[...] = jnp.dot(w3_ref[...], h, preferred_element_type=f32) + c3_ref[0, 0]


def _plan_batch(B):
    """256-aligned batch tile (lane axis), capped at TB_MAX; keep >= 2 grid steps whenever the
    batch allows it so the 'parallel' batch axis can shard across v7x's two TensorCores."""
    b_al = int(pl.cdiv(max(B, 1), 256)) * 256
    tb = min(TB_MAX, b_al)
    if b_al >= 512 and b_al // tb < 2:
        tb = max(256, (b_al // 2) // 256 * 256)
    bp = int(pl.cdiv(B, tb)) * tb
    return tb, bp


def _forward_impl(x_nchw, Mw, bMc, W2w, c2c, W3w, c3):
    """x_nchw: (N, 1, H, W) float32. Returns (N, 1) float32."""
    B = x_nchw.shape[0]
    tb, bp = _plan_batch(B)

    # NCHW flatten, put batch on the lane axis, cast the MXU operand to bf16 (fused under jit).
    xt = x_nchw.reshape(B, F0).T.astype(jnp.bfloat16)            # (8, B)
    if bp != B:
        # only 8 rows wide -> pad copy is negligible and fuses into the same jit region
        xt = jnp.pad(xt, ((0, 0), (0, bp - B)))

    full = lambda a: pl.BlockSpec(a.shape, lambda i: (0, 0))     # weights: fetched once
    out_t = pl.pallas_call(
        net_kernel,
        out_shape=jax.ShapeDtypeStruct((OUTP, bp), jnp.float32),
        grid=(bp // tb,),
        in_specs=[pl.BlockSpec((F0, tb), lambda i: (0, i)),      # x^T tile, lane-dense
                  full(Mw), full(bMc), full(W2w), full(c2c), full(W3w),
                  pl.BlockSpec(memory_space=pltpu.MemorySpace.SMEM)],  # (1,1) scalar bias
        out_specs=pl.BlockSpec((OUTP, tb), lambda i: (0, i)),    # lane-dense output tile
        compiler_params=pltpu.CompilerParams(dimension_semantics=("parallel",)),
    )(xt, Mw, bMc, W2w, c2c, W3w, c3)

    return out_t[0:1, :B].T                                      # (B, 1); row 0 is the output


net_forward_jit = jax.jit(_forward_impl)


def net_forward(x_nchw, ops):
    return net_forward_jit(x_nchw, ops["Mw"], ops["bMc"], ops["W2w"], ops["c2c"],
                           ops["W3w"], ops["c3"])


# --------------------- deterministic parameter setup ---------------------
def make_params():
    rng = np.random.default_rng(0)
    u = lambda *s: rng.uniform(-0.1, 0.1, size=s).astype(np.float32)

    # PyTorch-shaped parameters
    conv1_w, conv1_b = u(C1, CIN, 3, 3), u(C1)
    conv2_w, conv2_b = u(C2, C1, 3, 3), u(C2)
    lin1_w, lin1_b = u(L1, F2), u(L1)          # nn.Linear stores (out, in)
    lin2_w, lin2_b = u(L2, L1), u(L2)
    lin3_w, lin3_b = u(L3, L2), u(L3)

    # exact dense lowering of the conv / pool layers
    A1, b1 = conv3x3_same_as_matrix(conv1_w, conv1_b, H, W)     # (8,24), (24,)
    A2, b2 = conv3x3_same_as_matrix(conv2_w, conv2_b, H, W)     # (24,128), (128,)
    P1 = avgpool3x3_same_as_matrix(C1, H, W)                    # (24,24)
    P2 = avgpool3x3_same_as_matrix(C2, H, W)                    # (128,128)

    # fold the whole affine prefix + Linear1 into one matrix/bias (offline, ~1e-3 vs. the
    # original layer-by-layer float ordering — not bit-exact)
    W1t = lin1_w.T                                              # (128,120)
    M = A1 @ P1 @ A2 @ P2 @ W1t                                 # (8,120)
    bM = (((b1 @ P1) @ A2 + b2) @ P2) @ W1t + lin1_b            # (120,)

    # transposed, zero-padded operands (batch on the lane axis).  Padding is exact:
    # padded hidden rows are 0, ReLU(0)=0, and the next layer's padded columns are 0.
    Mw = np.zeros((L1P, F0), np.float32);   Mw[:L1, :] = M.T
    bMc = np.zeros((L1P, 1), np.float32);   bMc[:L1, 0] = bM
    W2w = np.zeros((L2P, L1P), np.float32); W2w[:L2, :L1] = lin2_w      # (out,in) as-is
    c2c = np.zeros((L2P, 1), np.float32);   c2c[:L2, 0] = lin2_b
    W3w = np.zeros((OUTP, L2P), np.float32); W3w[0, :L2] = lin3_w[0]
    c3 = lin3_b.reshape(1, 1).astype(np.float32)

    ops = {"Mw": jnp.asarray(Mw, jnp.bfloat16),    # MXU operands stored in bf16
           "bMc": jnp.asarray(bMc, jnp.float32),   # biases stay f32
           "W2w": jnp.asarray(W2w, jnp.bfloat16),
           "c2c": jnp.asarray(c2c, jnp.float32),
           "W3w": jnp.asarray(W3w, jnp.bfloat16),
           "c3": jnp.asarray(c3, jnp.float32)}

    # unfused f32 operators for a numpy reference check
    ref = {"A1": A1, "b1": b1, "P1": P1, "A2": A2, "b2": b2, "P2": P2,
           "W1t": W1t, "c1": lin1_b, "W2t": lin2_w.T, "c2": lin2_b,
           "W3t": lin3_w.T, "c3": lin3_b}
    return ops, ref


def reference_forward_np(x_nchw, r):
    """Unfused f32 numpy reference of the original module's forward."""
    x = np.asarray(x_nchw, np.float32).reshape(x_nchw.shape[0], F0)
    h = x @ r["A1"] + r["b1"]
    h = h @ r["P1"]
    h = h @ r["A2"] + r["b2"]
    h = h @ r["P2"]
    h = np.maximum(h @ r["W1t"] + r["c1"], 0.0)
    h = np.maximum(h @ r["W2t"] + r["c2"], 0.0)
    return h @ r["W3t"] + r["c3"]


if __name__ == "__main__":
    ops, ref = make_params()

    # deterministic example input, NCHW = (2, 1, 2, 4)
    x = jax.random.normal(jax.random.PRNGKey(0), (2, CIN, H, W), dtype=jnp.float32)
    y = net_forward(x, ops)
    jax.block_until_ready(y)
    assert y.shape == (2, 1) and y.dtype == jnp.float32
    y_ref = reference_forward_np(np.asarray(x), ref)
    # bf16 MXU operands -> ~1e-3 deviation from the f32 reference; check with margin.
    assert np.allclose(np.asarray(y), y_ref, rtol=2e-2, atol=2e-2)

    # second shape: exercises the multi-tile grid (2 steps) and the ragged-batch padding path
    x2 = jax.random.normal(jax.random.PRNGKey(1), (300, CIN, H, W), dtype=jnp.float32)
    y2 = net_forward(x2, ops)
    jax.block_until_ready(y2)
    assert y2.shape == (300, 1)
    y2_ref = reference_forward_np(np.asarray(x2), ref)
    assert np.allclose(np.asarray(y2), y2_ref, rtol=2e-2, atol=2e-2)

    print("KERNEL_OK")
</pallas_src>

<mosaic_0001>
module attributes {stable_mosaic.version = 11 : i64} {
  func.func @net_kernel(%arg0: i32, %arg1: memref<8x256xbf16, #tpu.memory_space<vmem>>, %arg2: memref<128x8xbf16, #tpu.memory_space<vmem>>, %arg3: memref<128x1xf32, #tpu.memory_space<vmem>>, %arg4: memref<128x128xbf16, #tpu.memory_space<vmem>>, %arg5: memref<128x1xf32, #tpu.memory_space<vmem>>, %arg6: memref<8x128xbf16, #tpu.memory_space<vmem>>, %arg7: memref<1x1xf32, #tpu.memory_space<smem>>, %arg8: memref<8x256xf32, #tpu.memory_space<vmem>>) attributes {dimension_semantics = [#tpu.dimension_semantics<parallel>], iteration_bounds = array<i64: 1>, scalar_prefetch = 0 : i64, scratch_operands = 0 : i64, tpu.core_type = #tpu.core_type<tc>, window_params = [{transform_indices = @transform_0, window_bounds = array<i64: 8, 256>}, {pipeline_mode = #tpu.pipeline_mode<synchronous>, transform_indices = @transform_1, window_bounds = array<i64: 128, 8>}, {pipeline_mode = #tpu.pipeline_mode<synchronous>, transform_indices = @transform_2, window_bounds = array<i64: 128, 1>}, {pipeline_mode = #tpu.pipeline_mode<synchronous>, transform_indices = @transform_3, window_bounds = array<i64: 128, 128>}, {pipeline_mode = #tpu.pipeline_mode<synchronous>, transform_indices = @transform_4, window_bounds = array<i64: 128, 1>}, {pipeline_mode = #tpu.pipeline_mode<synchronous>, transform_indices = @transform_5, window_bounds = array<i64: 8, 128>}, {transform_indices = @transform_6, window_bounds = array<i64: 1, 1>}, {transform_indices = @transform_7, window_bounds = array<i64: 8, 256>}]} {
    %c0 = arith.constant 0 : index
    %c0_0 = arith.constant 0 : index
    %0 = vector.load %arg2[%c0, %c0_0] : memref<128x8xbf16, #tpu.memory_space<vmem>>, vector<128x8xbf16>
    %c0_1 = arith.constant 0 : index
    %c0_2 = arith.constant 0 : index
    %1 = vector.load %arg1[%c0_1, %c0_2] : memref<8x256xbf16, #tpu.memory_space<vmem>>, vector<8x256xbf16>
    %cst = arith.constant dense<0.000000e+00> : vector<128x256xf32>
    %2 = tpu.matmul %0, %1, %cst {dimension_numbers = #tpu.dot_dimension_numbers<[1], [0], [0], [1], [0, 0, 1, 1], [], []>} : vector<128x8xbf16>, vector<8x256xbf16>, vector<128x256xf32> -> vector<128x256xf32>
    %c0_3 = arith.constant 0 : index
    %c0_4 = arith.constant 0 : index
    %3 = vector.load %arg3[%c0_3, %c0_4] : memref<128x1xf32, #tpu.memory_space<vmem>>, vector<128x1xf32>
    %4 = vector.broadcast %3 : vector<128x1xf32> to vector<128x256xf32>
    %5 = arith.addf %2, %4 : vector<128x256xf32>
    %cst_5 = arith.constant 0.000000e+00 : f32
    %6 = vector.broadcast %cst_5 : f32 to vector<128x256xf32>
    %7 = arith.maximumf %5, %6 : vector<128x256xf32>
    %8 = arith.truncf %7 : vector<128x256xf32> to vector<128x256xbf16>
    %c0_6 = arith.constant 0 : index
    %c0_7 = arith.constant 0 : index
    %9 = vector.load %arg4[%c0_6, %c0_7] : memref<128x128xbf16, #tpu.memory_space<vmem>>, vector<128x128xbf16>
    %cst_8 = arith.constant dense<0.000000e+00> : vector<128x256xf32>
    %10 = tpu.matmul %9, %8, %cst_8 {dimension_numbers = #tpu.dot_dimension_numbers<[1], [0], [0], [1], [0, 0, 1, 1], [], []>} : vector<128x128xbf16>, vector<128x256xbf16>, vector<128x256xf32> -> vector<128x256xf32>
    %c0_9 = arith.constant 0 : index
    %c0_10 = arith.constant 0 : index
    %11 = vector.load %arg5[%c0_9, %c0_10] : memref<128x1xf32, #tpu.memory_space<vmem>>, vector<128x1xf32>
    %12 = vector.broadcast %11 : vector<128x1xf32> to vector<128x256xf32>
    %13 = arith.addf %10, %12 : vector<128x256xf32>
    %cst_11 = arith.constant 0.000000e+00 : f32
    %14 = vector.broadcast %cst_11 : f32 to vector<128x256xf32>
    %15 = arith.maximumf %13, %14 : vector<128x256xf32>
    %16 = arith.truncf %15 : vector<128x256xf32> to vector<128x256xbf16>
    %c0_12 = arith.constant 0 : index
    %c0_13 = arith.constant 0 : index
    %17 = vector.load %arg6[%c0_12, %c0_13] : memref<8x128xbf16, #tpu.memory_space<vmem>>, vector<8x128xbf16>
    %cst_14 = arith.constant dense<0.000000e+00> : vector<8x256xf32>
    %18 = tpu.matmul %17, %16, %cst_14 {dimension_numbers = #tpu.dot_dimension_numbers<[1], [0], [0], [1], [0, 0, 1, 1], [], []>} : vector<8x128xbf16>, vector<128x256xbf16>, vector<8x256xf32> -> vector<8x256xf32>
    %c0_15 = arith.constant 0 : index
    %c0_16 = arith.constant 0 : index
    %19 = memref.load %arg7[%c0_15, %c0_16] : memref<1x1xf32, #tpu.memory_space<smem>>
    %20 = vector.broadcast %19 : f32 to vector<8x256xf32>
    %21 = arith.addf %18, %20 : vector<8x256xf32>
    %c0_17 = arith.constant 0 : index
    %c0_18 = arith.constant 0 : index
    %22 = vector.load %arg8[%c0_17, %c0_18] : memref<8x256xf32, #tpu.memory_space<vmem>>, vector<8x256xf32>
    tpu.vector_store %arg8[%c0_17, %c0_18], %21 {strides = array<i32>} : memref<8x256xf32, #tpu.memory_space<vmem>>, vector<8x256xf32>,
    return
  }
  func.func @transform_0(%arg0: i32) -> (i32, i32) {
    %c0_i32 = arith.constant 0 : i32
    %c0_i32_0 = arith.constant 0 : i32
    return %c0_i32, %arg0 : i32, i32
  }
  func.func @transform_1(%arg0: i32) -> (i32, i32) {
    %c0_i32 = arith.constant 0 : i32
    %c0_i32_0 = arith.constant 0 : i32
    %c0_i32_1 = arith.constant 0 : i32
    return %c0_i32, %c0_i32_0 : i32, i32
  }
  func.func @transform_2(%arg0: i32) -> (i32, i32) {
    %c0_i32 = arith.constant 0 : i32
    %c0_i32_0 = arith.constant 0 : i32
    %c0_i32_1 = arith.constant 0 : i32
    return %c0_i32, %c0_i32_0 : i32, i32
  }
  func.func @transform_3(%arg0: i32) -> (i32, i32) {
    %c0_i32 = arith.constant 0 : i32
    %c0_i32_0 = arith.constant 0 : i32
    %c0_i32_1 = arith.constant 0 : i32
    return %c0_i32, %c0_i32_0 : i32, i32
  }
  func.func @transform_4(%arg0: i32) -> (i32, i32) {
    %c0_i32 = arith.constant 0 : i32
    %c0_i32_0 = arith.constant 0 : i32
    %c0_i32_1 = arith.constant 0 : i32
    return %c0_i32, %c0_i32_0 : i32, i32
  }
  func.func @transform_5(%arg0: i32) -> (i32, i32) {
    %c0_i32 = arith.constant 0 : i32
    %c0_i32_0 = arith.constant 0 : i32
    %c0_i32_1 = arith.constant 0 : i32
    return %c0_i32, %c0_i32_0 : i32, i32
  }
  func.func @transform_6(%arg0: i32) -> (i32, i32) {
    %c0_i32 = arith.constant 0 : i32
    %c0_i32_0 = arith.constant 0 : i32
    %c0_i32_1 = arith.constant 0 : i32
    return %c0_i32, %c0_i32_0 : i32, i32
  }
  func.func @transform_7(%arg0: i32) -> (i32, i32) {
    %c0_i32 = arith.constant 0 : i32
    %c0_i32_0 = arith.constant 0 : i32
    return %c0_i32, %arg0 : i32, i32
  }
}

</mosaic_0001>

<bundles_post_ra>
// kernel: _forward_impl.1
= control target key start
LH: loop header
LB: loop body
LE: loop exit
PB: predicated region body
PF: predicated region fallthrough
CT: control target
= control target key end

     0   :  { %v805_v0 = vmov 0   ;;  %vm211_vm0 = vcmask 1043456   ;;  %vm186_vm1 = vcmask 64512   ;;  %s1133_s2 = inlined_call_operand.vmem [shape: f32[128,1], index: 2, kind: input, shape index: {}]   ;;  %s1134_s0 = inlined_call_operand.vmem [shape: bf16[8,256], index: 0, kind: input, shape index: {}]   ;;  %s1135_s1 = inlined_call_operand.vmem [shape: bf16[128,8], index: 1, kind: input, shape index: {}]   ;;  %s1136_s4 = inlined_call_operand.vmem [shape: f32[128,1], index: 4, kind: input, shape index: {}]   ;;  %s1137_s3 = inlined_call_operand.vmem [shape: bf16[128,128], index: 3, kind: input, shape index: {}]   ;;  %s1138_s5 = inlined_call_operand.vmem [shape: bf16[8,128], index: 5, kind: input, shape index: {}]   ;;  %s1139_s6 = inlined_call_operand.<no memory space> [shape: f32[1,1], index: 6, kind: input, shape index: {}]   ;;  %s1140_s7 = inlined_call_operand.vmem [shape: f32[8,256], index: 7, kind: output, shape index: {}]  }
   0x1   :  { %802 = vset.pattern.permute.xlu0 %v805_v0  ;;  %v59_v1 = vld [vmem:[%s1133_s2 + $0x70] sm:$0xff]  ;;  %v44_v2 = vld [vmem:[%s1134_s0] sm:$0xff]  ;;  %804 = vset.pattern.permute.xlu2 %v805_v0  ;;  %v60_v12 = vld [vmem:[%s1133_s2 + $0x78] sm:$0xff] }
   0x2   :  { %133 = vperm.xlu0 %802, %v59_v1   ;;  %v182_v3 = vunpack.c.l.b16 %v44_v2  ;;  %v183_v4 = vunpack.c.h.b16 %v44_v2  ;;  %803 = vset.pattern.permute.xlu1 %v805_v0  ;;  %v57_v5 = vld [vmem:[%s1133_s2 + $0x60] sm:$0xff]  ;;  %v55_v6 = vld [vmem:[%s1133_s2 + $0x50] sm:$0xff]  ;;  %v58_v13 = vld [vmem:[%s1133_s2 + $0x68] sm:$0xff] }
   0x3   :  { %123 = vperm.xlu1 %803, %v57_v5   ;;  %113 = vperm.xlu2 %804, %v55_v6   ;;  %v785_v11 = vld [vmem:[%s1135_s1] sm:$0xff]  ;;  %v56_v14 = vld [vmem:[%s1133_s2 + $0x58] sm:$0xff]  ;;  %v54_v16 = vld [vmem:[%s1133_s2 + $0x48] sm:$0xff] }
   0x4   :  { %v184_v7 = vpack.c.b16 %v182_v3, %v182_v3  ;;  %v185_v8 = vpack.c.b16 %v183_v4, %v183_v4  ;;  %v53_v15 = vld [vmem:[%s1133_s2 + $0x40] sm:$0xff]  ;;  %v51_v17 = vld [vmem:[%s1133_s2 + $0x30] sm:$0xff]  ;;  %v786_v18 = vld [vmem:[%s1135_s1 + $0x8] sm:$0xff] }
   0x5   :  { %v52_v19 = vld [vmem:[%s1133_s2 + $0x38] sm:$0xff]  ;;  %v49_v20 = vld [vmem:[%s1133_s2 + $0x20] sm:$0xff]  ;;  %v50_v21 = vld [vmem:[%s1133_s2 + $0x28] sm:$0xff] }
   0x6   :  { %v213_v9 = vsel %vm211_vm0, %v184_v7, 0  ;;  %v216_v10 = vsel %vm211_vm0, %v185_v8, 0  ;;  %v47_v22 = vld [vmem:[%s1133_s2 + $0x10] sm:$0xff]  ;;  %v48_v23 = vld [vmem:[%s1133_s2 + $0x18] sm:$0xff]  ;;  %v45_v24 = vld [vmem:[%s1133_s2] sm:$0xff] }
   0x7   :  { %225 = vmatpush.bf16.msra.mxu0 %v213_v9  ;;  %274 = vmatpush.bf16.msra.mxu1 %v216_v10  ;;  %v787_v25 = vld [vmem:[%s1135_s1 + $0x10] sm:$0xff]  ;;  %v46_v26 = vld [vmem:[%s1133_s2 + $0x8] sm:$0xff]  ;;  %v788_v27 = vld [vmem:[%s1135_s1 + $0x18] sm:$0xff] }
   0x8   :  { %v394_v28 = vld [vmem:[%s1136_s4 + $0x70] sm:$0xff]  ;;  %v392_v29 = vld [vmem:[%s1136_s4 + $0x60] sm:$0xff]  ;;  %v393_v30 = vld [vmem:[%s1136_s4 + $0x68] sm:$0xff] }
   0x9   :  { %v391_v31 = vld [vmem:[%s1136_s4 + $0x58] sm:$0xff]  ;;  %v789_v32 = vld [vmem:[%s1135_s1 + $0x20] sm:$0xff]  ;;  %v386_v34 = vld [vmem:[%s1136_s4 + $0x30] sm:$0xff] }
   0xa   :  { %138 = vperm.xlu0 %802, %v60_v12   ;;  %737 = vmatmul.msk.bf16.vlgmr.msra.gmra.mxu0 %vm186_vm1, %v785_v11  ;;  %v388_v33 = vld [vmem:[%s1136_s4 + $0x40] sm:$0xff]  ;;  %v387_v35 = vld [vmem:[%s1136_s4 + $0x38] sm:$0xff]  ;;  %v385_v36 = vld [vmem:[%s1136_s4 + $0x28] sm:$0xff] }
   0xb   :  { %745 = vmatmul.msk.bf16.vlgmr.msra.gmra.mxu1 %vm186_vm1, %v785_v11  ;;  %128 = vperm.xlu1 %803, %v58_v13   ;;  %v790_v37 = vld [vmem:[%s1135_s1 + $0x28] sm:$0xff]  ;;  %v382_v38 = vld [vmem:[%s1136_s4 + $0x10] sm:$0xff]  ;;  %v380_v39 = vld [vmem:[%s1136_s4] sm:$0xff] }
   0xc   :  { %118 = vperm.xlu2 %804, %v56_v14   ;;  %v395_v40 = vld [vmem:[%s1136_s4 + $0x78] sm:$0xff]  ;;  %v381_v41 = vld [vmem:[%s1136_s4 + $0x8] sm:$0xff]  ;;  %v791_v42 = vld [vmem:[%s1135_s1 + $0x30] sm:$0xff] }
   0xd   :  { %v390_v43 = vld [vmem:[%s1136_s4 + $0x50] sm:$0xff]  ;;  %v389_v45 = vld [vmem:[%s1136_s4 + $0x48] sm:$0xff]  ;;  %v792_v48 = vld [vmem:[%s1135_s1 + $0x38] sm:$0xff] }
   0xe   :  { %v384_v50 = vld [vmem:[%s1136_s4 + $0x20] sm:$0xff]  ;;  %v383_v53 = vld [vmem:[%s1136_s4 + $0x18] sm:$0xff] }
  0x12   :  { %103 = vperm.xlu0 %802, %v53_v15  }
  0x13   :  { %108 = vperm.xlu1 %803, %v54_v16  }
  0x14   :  { %93 = vperm.xlu2 %804, %v51_v17  }
  0x1a   :  { %98 = vperm.xlu0 %802, %v52_v19   ;;  %738 = vmatmul.msk.bf16.gmra.mxu0 %vm186_vm1, %v786_v18 }
  0x1b   :  { %746 = vmatmul.msk.bf16.gmra.mxu1 %vm186_vm1, %v786_v18  ;;  %83 = vperm.xlu1 %803, %v49_v20  }
  0x1c   :  { %88 = vperm.xlu2 %804, %v50_v21  }
  0x22   :  { %73 = vperm.xlu0 %802, %v47_v22  }
  0x23   :  { %78 = vperm.xlu1 %803, %v48_v23  }
  0x24   :  { %63 = vperm.xlu2 %804, %v45_v24  }
  0x2a   :  { %68 = vperm.xlu0 %802, %v46_v26   ;;  %739 = vmatmul.msk.bf16.gmra.mxu0 %vm186_vm1, %v787_v25 }
  0x2b   :  { %747 = vmatmul.msk.bf16.gmra.mxu1 %vm186_vm1, %v787_v25  ;;  %468 = vperm.xlu1 %803, %v394_v28  }
  0x2c   :  { %473 = vperm.xlu2 %804, %v395_v40  }
  0x32   :  { %458 = vperm.xlu0 %802, %v392_v29  }
  0x33   :  { %463 = vperm.xlu1 %803, %v393_v30  }
  0x34   :  { %448 = vperm.xlu2 %804, %v390_v43  }
  0x3a   :  { %740 = vmatmul.msk.bf16.gmra.mxu0 %vm186_vm1, %v788_v27  ;;  %453 = vperm.xlu0 %802, %v391_v31  }
  0x3b   :  { %748 = vmatmul.msk.bf16.gmra.mxu1 %vm186_vm1, %v788_v27  ;;  %438 = vperm.xlu1 %803, %v388_v33  }
  0x3c   :  { %443 = vperm.xlu2 %804, %v389_v45  }
  0x42   :  { %428 = vperm.xlu0 %802, %v386_v34  }
  0x43   :  { %433 = vperm.xlu1 %803, %v387_v35  }
  0x44   :  { %418 = vperm.xlu2 %804, %v384_v50  }
  0x4a   :  { %741 = vmatmul.msk.bf16.gmra.mxu0 %vm186_vm1, %v789_v32  ;;  %423 = vperm.xlu0 %802, %v385_v36  }
  0x4b   :  { %749 = vmatmul.msk.bf16.gmra.mxu1 %vm186_vm1, %v789_v32  ;;  %408 = vperm.xlu1 %803, %v382_v38  }
  0x4c   :  { %413 = vperm.xlu2 %804, %v383_v53  }
  0x52   :  { %398 = vperm.xlu0 %802, %v380_v39  }
  0x53   :  { %403 = vperm.xlu1 %803, %v381_v41  }
  0x5a   :  { %742 = vmatmul.msk.bf16.gmra.mxu0 %vm186_vm1, %v790_v37 }
  0x5b   :  { %750 = vmatmul.msk.bf16.gmra.mxu1 %vm186_vm1, %v790_v37 }
  0x5d   :  { %v971_v44 = vpop.permute.xlu2 %113 }
  0x66   :  { %v983_v49 = vpop.permute.xlu2 %118 }
  0x6a   :  { %743 = vmatmul.msk.bf16.gmra.mxu0 %vm186_vm1, %v791_v42 }
  0x6b   :  { %751 = vmatmul.msk.bf16.gmra.mxu1 %vm186_vm1, %v791_v42 }
  0x6e   :  { %v94_v54 = vpop.permute.xlu2 %93 }
  0x74   :  { %v976_v46 = vpop.permute.xlu0 %133 }
  0x75   :  { %v978_v47 = vpop.permute.xlu1 %123 }
  0x76   :  { %v89_v60 = vpop.permute.xlu2 %88 }
  0x7a   :  { %744 = vmatmul.msk.bf16.gmra.mxu0 %vm186_vm1, %v792_v48 }
  0x7b   :  { %752 = vmatmul.msk.bf16.gmra.mxu1 %vm186_vm1, %v792_v48 }
  0x7c   :  { %v990_v51 = vpop.permute.xlu0 %138 }
  0x7d   :  { %v992_v52 = vpop.permute.xlu1 %128 }
  0x7e   :  { %v64_v1 = vpop.permute.xlu2 %63 }
  0x84   :  { %v997_v55 = vpop.permute.xlu0 %103 }
  0x85   :  { %v999_v58 = vpop.permute.xlu1 %108 }
  0x87   :  { %v227_v56 = vpop.f32.mrf.mxu0 }
  0x88   :  { %v276_v57 = vpop.f32.mrf.mxu1  ;;  %v228_v4 = vadd.f32 %v227_v56, %v64_v1 }
  0x89   :  { %v277_v5 = vadd.f32 %v276_v57, %v64_v1 }
  0x8a   :  { %v316_v10 = vmax.f32 %v228_v4, 0.0 }
  0x8b   :  { %v317_v12 = vmax.f32 %v277_v5, 0.0 }
  0x8c   :  { %v99_v59 = vpop.permute.xlu0 %98 }
  0x8d   :  { %v84_v63 = vpop.permute.xlu1 %83 }
  0x8f   :  { %v229_v61 = vpop.f32.mrf.mxu0 }
  0x90   :  { %v278_v62 = vpop.f32.mrf.mxu1 }
  0x94   :  { %v74_v0 = vpop.permute.xlu0 %73 }
  0x95   :  { %v79_v9 = vpop.permute.xlu1 %78 }
  0x97   :  { %v232_v2 = vpop.f32.mrf.mxu0 }
  0x98   :  { %v281_v3 = vpop.f32.mrf.mxu1  ;;  %v233_v11 = vadd.f32 %v232_v2, %v74_v0 }
  0x99   :  { %v282_v13 = vadd.f32 %v281_v3, %v74_v0 }
  0x9a   :  { %v320_v22 = vmax.f32 %v233_v11, 0.0 }
  0x9b   :  { %v321_v24 = vmax.f32 %v282_v13, 0.0 }
  0x9c   :  { %v69_v6 = vpop.permute.xlu0 %68 }
  0x9d   :  { %v230_v7 = vadd.f32 %v229_v61, %v69_v6  ;;  %v279_v8 = vadd.f32 %v278_v62, %v69_v6 }
  0x9f   :  { %v318_v14 = vmax.f32 %v230_v7, 0.0  ;;  %v319_v15 = vmax.f32 %v279_v8, 0.0  ;;  %v234_v16 = vpop.f32.mrf.mxu0 }
  0xa0   :  { %v235_v17 = vadd.f32 %v234_v16, %v79_v9  ;;  %v283_v18 = vpop.f32.mrf.mxu1 }
  0xa1   :  { %v284_v19 = vadd.f32 %v283_v18, %v79_v9  ;;  %v1001_v20 = vpack.c.bf16 %v318_v14, %v316_v10  ;;  %v1003_v21 = vpack.c.bf16 %v319_v15, %v317_v12 }
  0xa2   :  { %v322_v23 = vmax.f32 %v235_v17, 0.0 }
  0xa3   :  { %v323_v25 = vmax.f32 %v284_v19, 0.0 }
  0xa4   :  { %v1005_v26 = vpack.c.bf16 %v322_v23, %v320_v22 }
  0xa5   :  { %v1007_v27 = vpack.c.bf16 %v323_v25, %v321_v24 }
  0xa7   :  { %v237_v28 = vpop.f32.mrf.mxu0 }
  0xa8   :  { %v286_v29 = vpop.f32.mrf.mxu1  ;;  %v238_v30 = vadd.f32 %v237_v28, %v84_v63 }
  0xa9   :  { %v287_v31 = vadd.f32 %v286_v29, %v84_v63 }
  0xaa   :  { %v324_v36 = vmax.f32 %v238_v30, 0.0 }
  0xab   :  { %v325_v38 = vmax.f32 %v287_v31, 0.0 }
  0xaf   :  { %v239_v32 = vpop.f32.mrf.mxu0 }
  0xb0   :  { %v240_v33 = vadd.f32 %v239_v32, %v89_v60  ;;  %v288_v34 = vpop.f32.mrf.mxu1 }
  0xb1   :  { %v289_v35 = vadd.f32 %v288_v34, %v89_v60 }
  0xb2   :  { %v326_v37 = vmax.f32 %v240_v33, 0.0 }
  0xb3   :  { %v327_v39 = vmax.f32 %v289_v35, 0.0 }
  0xb4   :  { %v1009_v40 = vpack.c.bf16 %v326_v37, %v324_v36 }
  0xb5   :  { %v1011_v41 = vpack.c.bf16 %v327_v39, %v325_v38 }
  0xb7   :  { %v242_v42 = vpop.f32.mrf.mxu0 }
  0xb8   :  { %v291_v43 = vpop.f32.mrf.mxu1  ;;  %v243_v45 = vadd.f32 %v242_v42, %v94_v54 }
  0xb9   :  { %v292_v48 = vadd.f32 %v291_v43, %v94_v54 }
  0xba   :  { %v328_v61 = vmax.f32 %v243_v45, 0.0 }
  0xbb   :  { %v329_v63 = vmax.f32 %v292_v48, 0.0 }
  0xbf   :  { %v244_v50 = vpop.f32.mrf.mxu0 }
  0xc0   :  { %v245_v53 = vadd.f32 %v244_v50, %v99_v59  ;;  %v293_v56 = vpop.f32.mrf.mxu1 }
  0xc1   :  { %v294_v57 = vadd.f32 %v293_v56, %v99_v59 }
  0xc2   :  { %v330_v62 = vmax.f32 %v245_v53, 0.0 }
  0xc3   :  { %v331_v60 = vmax.f32 %v294_v57, 0.0 }
  0xc4   :  { %v1013_v0 = vpack.c.bf16 %v330_v62, %v328_v61 }
  0xc5   :  { %v1015_v1 = vpack.c.bf16 %v331_v60, %v329_v63 }
  0xc7   :  { %v247_v2 = vpop.f32.mrf.mxu0 }
  0xc8   :  { %v296_v3 = vpop.f32.mrf.mxu1 }
  0xc9   :  { %v297_v53 = vadd.f32 %v296_v3, %v997_v55 }
  0xcb   :  { %v333_v60 = vmax.f32 %v297_v53, 0.0 }
  0xcf   :  { %v249_v4 = vpop.f32.mrf.mxu0 }
  0xd0   :  { %v298_v5 = vpop.f32.mrf.mxu1 }
  0xd1   :  { %v299_v43 = vadd.f32 %v298_v5, %v999_v58  ;;  %v800_v5 = vld [vmem:[%s1137_s3 + $0x38] sm:$0xff] }
  0xd3   :  { %v335_v61 = vmax.f32 %v299_v43, 0.0 }
  0xd7   :  { %v252_v6 = vpop.f32.mrf.mxu0 }
  0xd8   :  { %v301_v7 = vpop.f32.mrf.mxu1 }
  0xdf   :  { %v254_v8 = vpop.f32.mrf.mxu0 }
  0xe0   :  { %v303_v54 = vpop.f32.mrf.mxu1 }
  0xe1   :  { %v304_v34 = vadd.f32 %v303_v54, %v983_v49 }
  0xe3   :  { %v339_v45 = vmax.f32 %v304_v34, 0.0 }
  0xe7   :  { %v257_v9 = vpop.f32.mrf.mxu0 }
  0xe8   :  { %v306_v10 = vpop.f32.mrf.mxu1  ;;  %v258_v24 = vadd.f32 %v257_v9, %v978_v47 }
  0xe9   :  { %v307_v29 = vadd.f32 %v306_v10, %v978_v47  ;;  %v250_v47 = vadd.f32 %v249_v4, %v999_v58  ;;  %v357_v58 = vpack.c.bf16 %v335_v61, %v333_v60 }
  0xea   :  { %v340_v37 = vmax.f32 %v258_v24, 0.0 }
  0xeb   :  { %v341_v38 = vmax.f32 %v307_v29, 0.0  ;;  %v334_v57 = vmax.f32 %v250_v47, 0.0 }
  0xef   :  { %v259_v11 = vpop.f32.mrf.mxu0 }
  0xf0   :  { %v308_v59 = vpop.f32.mrf.mxu1  ;;  %v260_v17 = vadd.f32 %v259_v11, %v992_v52 }
  0xf1   :  { %v309_v22 = vadd.f32 %v308_v59, %v992_v52  ;;  %v253_v52 = vadd.f32 %v252_v6, %v971_v44 }
  0xf2   :  { %v342_v32 = vmax.f32 %v260_v17, 0.0 }
  0xf3   :  { %v343_v35 = vmax.f32 %v309_v22, 0.0  ;;  %v336_v50 = vmax.f32 %v253_v52, 0.0 }
  0xf4   :  { %v360_v42 = vpack.c.bf16 %v342_v32, %v340_v37 }
  0xf5   :  { %v361_v48 = vpack.c.bf16 %v343_v35, %v341_v38 }
  0xf7   :  { %v262_v12 = vpop.f32.mrf.mxu0 }
  0xf8   :  { %v311_v13 = vpop.f32.mrf.mxu1  ;;  %v263_v14 = vadd.f32 %v262_v12, %v976_v46 }
  0xf9   :  { %v312_v15 = vadd.f32 %v311_v13, %v976_v46  ;;  %v255_v46 = vadd.f32 %v254_v8, %v983_v49  ;;  %v248_v49 = vadd.f32 %v247_v2, %v997_v55  ;;  %v793_v55 = vld [vmem:[%s1137_s3] sm:$0xff] }
  0xfa   :  { %v344_v25 = vmax.f32 %v263_v14, 0.0 }
  0xfb   :  { %v345_v30 = vmax.f32 %v312_v15, 0.0  ;;  %v338_v39 = vmax.f32 %v255_v46, 0.0  ;;  %v332_v63 = vmax.f32 %v248_v49, 0.0 }
  0xfd   :  { %v356_v4 = vpack.c.bf16 %v334_v57, %v332_v63 }
  0xff   :  { %v264_v16 = vpop.f32.mrf.mxu0 }
 0x100   :  { %v265_v18 = vadd.f32 %v264_v16, %v990_v51  ;;  %v313_v19 = vpop.f32.mrf.mxu1 }
 0x101   :  { %v314_v23 = vadd.f32 %v313_v19, %v990_v51  ;;  %v302_v51 = vadd.f32 %v301_v7, %v971_v44  ;;  %v358_v44 = vpack.c.bf16 %v338_v39, %v336_v50  ;;  %v1075_v7 = vpop.permute.xlu2 %473 }
 0x102   :  { %v346_v28 = vmax.f32 %v265_v18, 0.0 }
 0x103   :  { %v347_v31 = vmax.f32 %v314_v23, 0.0  ;;  %v337_v56 = vmax.f32 %v302_v51, 0.0 }
 0x104   :  { %v362_v33 = vpack.c.bf16 %v346_v28, %v344_v25 }
 0x105   :  { %v363_v36 = vpack.c.bf16 %v347_v31, %v345_v30  ;;  %v359_v62 = vpack.c.bf16 %v339_v45, %v337_v56 }
 0x106   :  { %524 = vmatpush.bf16.msra.mxu2 %v362_v33 }
 0x107   :  { %573 = vmatpush.bf16.msra.mxu3 %v363_v36 }
 0x109   :  { %v1077_v9 = vpop.permute.xlu2 %448 }
 0x10a   :  { %525 = vmatpush.bf16.msra.mxu2 %v360_v42 }
 0x10b   :  { %574 = vmatpush.bf16.msra.mxu3 %v361_v48 }
 0x10e   :  { %526 = vmatpush.bf16.msra.mxu2 %v358_v44 }
 0x10f   :  { %575 = vmatpush.bf16.msra.mxu3 %v359_v62 }
 0x111   :  { %v1079_v13 = vpop.permute.xlu2 %443 }
 0x112   :  { %527 = vmatpush.bf16.msra.mxu2 %v356_v4 }
 0x113   :  { %576 = vmatpush.bf16.msra.mxu3 %v357_v58 }
 0x116   :  { %528 = vmatpush.bf16.msra.mxu2 %v1013_v0  ;;  %v799_v0 = vld [vmem:[%s1137_s3 + $0x30] sm:$0xff] }
 0x117   :  { %577 = vmatpush.bf16.msra.mxu3 %v1015_v1  ;;  %v1064_v1 = vpop.permute.xlu0 %458 }
 0x119   :  { %v419_v31 = vpop.permute.xlu2 %418 }
 0x11a   :  { %529 = vmatpush.bf16.msra.mxu2 %v1009_v40  ;;  %v794_v40 = vld [vmem:[%s1137_s3 + $0x8] sm:$0xff] }
 0x11b   :  { %578 = vmatpush.bf16.msra.mxu3 %v1011_v41  ;;  %v1059_v41 = vpop.permute.xlu1 %468 }
 0x11e   :  { %530 = vmatpush.bf16.msra.mxu2 %v1005_v26  ;;  %v795_v26 = vld [vmem:[%s1137_s3 + $0x10] sm:$0xff] }
 0x11f   :  { %579 = vmatpush.bf16.msra.mxu3 %v1007_v27  ;;  %v798_v27 = vld [vmem:[%s1137_s3 + $0x28] sm:$0xff]  ;;  %v1068_v3 = vpop.permute.xlu0 %453 }
 0x121   :  { %v414_v35 = vpop.permute.xlu2 %413 }
 0x122   :  { %531 = vmatpush.bf16.msra.mxu2 %v1001_v20  ;;  %v796_v20 = vld [vmem:[%s1137_s3 + $0x18] sm:$0xff] }
 0x123   :  { %580 = vmatpush.bf16.msra.mxu3 %v1003_v21  ;;  %v797_v21 = vld [vmem:[%s1137_s3 + $0x20] sm:$0xff]  ;;  %v1066_v2 = vpop.permute.xlu1 %463 }
 0x125   :  { %532 = vmatmul.bf16.vlgmr.msra.gmra.mxu2 %v793_v55 }
 0x126   :  { %581 = vmatmul.bf16.vlgmr.msra.gmra.mxu3 %v793_v55 }
 0x127   :  { %v429_v8 = vpop.permute.xlu0 %428 }
 0x12b   :  { %v1073_v6 = vpop.permute.xlu1 %438 }
 0x12f   :  { %v424_v10 = vpop.permute.xlu0 %423 }
 0x133   :  { %v434_v54 = vpop.permute.xlu1 %433 }
 0x135   :  { %537 = vmatmul.bf16.gmra.mxu2 %v794_v40 }
 0x136   :  { %586 = vmatmul.bf16.gmra.mxu3 %v794_v40 }
 0x137   :  { %v399_v14 = vpop.permute.xlu0 %398 }
 0x13b   :  { %v409_v11 = vpop.permute.xlu1 %408 }
 0x143   :  { %v404_v16 = vpop.permute.xlu1 %403 }
 0x145   :  { %542 = vmatmul.bf16.gmra.mxu2 %v795_v26 }
 0x146   :  { %591 = vmatmul.bf16.gmra.mxu3 %v795_v26 }
 0x155   :  { %547 = vmatmul.bf16.gmra.mxu2 %v796_v20 }
 0x156   :  { %596 = vmatmul.bf16.gmra.mxu3 %v796_v20 }
 0x165   :  { %552 = vmatmul.bf16.gmra.mxu2 %v797_v21 }
 0x166   :  { %601 = vmatmul.bf16.gmra.mxu3 %v797_v21 }
 0x175   :  { %557 = vmatmul.bf16.gmra.mxu2 %v798_v27 }
 0x176   :  { %606 = vmatmul.bf16.gmra.mxu3 %v798_v27 }
 0x185   :  { %562 = vmatmul.bf16.gmra.mxu2 %v799_v0 }
 0x186   :  { %611 = vmatmul.bf16.gmra.mxu3 %v799_v0 }
 0x195   :  { %567 = vmatmul.bf16.gmra.mxu2 %v800_v5 }
 0x196   :  { %616 = vmatmul.bf16.gmra.mxu3 %v800_v5 }
 0x1a8   :  { %v533_v59 = vpop.f32.mrf.mxu2 }
 0x1a9   :  { %v582_v12 = vpop.f32.mrf.mxu3  ;;  %v534_v15 = vadd.f32 %v533_v59, %v399_v14 }
 0x1aa   :  { %v583_v17 = vadd.f32 %v582_v12, %v399_v14 }
 0x1ab   :  { %v622_v24 = vmax.f32 %v534_v15, 0.0 }
 0x1ac   :  { %v623_v28 = vmax.f32 %v583_v17, 0.0 }
 0x1b0   :  { %v535_v18 = vpop.f32.mrf.mxu2 }
 0x1b1   :  { %v536_v19 = vadd.f32 %v535_v18, %v404_v16  ;;  %v584_v22 = vpop.f32.mrf.mxu3 }
 0x1b2   :  { %v585_v23 = vadd.f32 %v584_v22, %v404_v16 }
 0x1b3   :  { %v624_v25 = vmax.f32 %v536_v19, 0.0 }
 0x1b4   :  { %v625_v29 = vmax.f32 %v585_v23, 0.0 }
 0x1b5   :  { %v1081_v30 = vpack.c.bf16 %v624_v25, %v622_v24 }
 0x1b6   :  { %v1083_v46 = vpack.c.bf16 %v625_v29, %v623_v28 }
 0x1b8   :  { %v538_v32 = vpop.f32.mrf.mxu2 }
 0x1b9   :  { %v587_v33 = vpop.f32.mrf.mxu3  ;;  %v539_v34 = vadd.f32 %v538_v32, %v409_v11 }
 0x1ba   :  { %v588_v36 = vadd.f32 %v587_v33, %v409_v11 }
 0x1bb   :  { %v626_v47 = vmax.f32 %v539_v34, 0.0 }
 0x1bc   :  { %v627_v42 = vmax.f32 %v588_v36, 0.0 }
 0x1c0   :  { %v540_v52 = vpop.f32.mrf.mxu2 }
 0x1c1   :  { %v541_v37 = vadd.f32 %v540_v52, %v414_v35  ;;  %v589_v51 = vpop.f32.mrf.mxu3 }
 0x1c2   :  { %v590_v38 = vadd.f32 %v589_v51, %v414_v35 }
 0x1c3   :  { %v628_v39 = vmax.f32 %v541_v37, 0.0 }
 0x1c4   :  { %v629_v43 = vmax.f32 %v590_v38, 0.0 }
 0x1c5   :  { %v1085_v45 = vpack.c.bf16 %v628_v39, %v626_v47 }
 0x1c6   :  { %v1087_v48 = vpack.c.bf16 %v629_v43, %v627_v42 }
 0x1c8   :  { %v543_v49 = vpop.f32.mrf.mxu2 }
 0x1c9   :  { %v592_v50 = vpop.f32.mrf.mxu3  ;;  %v544_v53 = vadd.f32 %v543_v49, %v419_v31 }
 0x1ca   :  { %v593_v56 = vadd.f32 %v592_v50, %v419_v31 }
 0x1cb   :  { %v630_v63 = vmax.f32 %v544_v53, 0.0 }
 0x1cc   :  { %v631_v4 = vmax.f32 %v593_v56, 0.0 }
 0x1d0   :  { %v545_v57 = vpop.f32.mrf.mxu2 }
 0x1d1   :  { %v546_v44 = vadd.f32 %v545_v57, %v424_v10  ;;  %v594_v61 = vpop.f32.mrf.mxu3 }
 0x1d2   :  { %v595_v62 = vadd.f32 %v594_v61, %v424_v10 }
 0x1d3   :  { %v632_v60 = vmax.f32 %v546_v44, 0.0 }
 0x1d4   :  { %v633_v58 = vmax.f32 %v595_v62, 0.0 }
 0x1d5   :  { %v1089_v55 = vpack.c.bf16 %v632_v60, %v630_v63 }
 0x1d6   :  { %v1091_v40 = vpack.c.bf16 %v633_v58, %v631_v4 }
 0x1d8   :  { %v548_v26 = vpop.f32.mrf.mxu2 }
 0x1d9   :  { %v597_v20 = vpop.f32.mrf.mxu3  ;;  %v549_v21 = vadd.f32 %v548_v26, %v429_v8 }
 0x1da   :  { %v598_v27 = vadd.f32 %v597_v20, %v429_v8 }
 0x1db   :  { %v634_v12 = vmax.f32 %v549_v21, 0.0 }
 0x1dc   :  { %v635_v15 = vmax.f32 %v598_v27, 0.0 }
 0x1e0   :  { %v550_v0 = vpop.f32.mrf.mxu2 }
 0x1e1   :  { %v551_v5 = vadd.f32 %v550_v0, %v434_v54  ;;  %v599_v11 = vpop.f32.mrf.mxu3 }
 0x1e2   :  { %v600_v59 = vadd.f32 %v599_v11, %v434_v54 }
 0x1e3   :  { %v636_v14 = vmax.f32 %v551_v5, 0.0 }
 0x1e4   :  { %v637_v10 = vmax.f32 %v600_v59, 0.0 }
 0x1e5   :  { %v1093_v16 = vpack.c.bf16 %v636_v14, %v634_v12 }
 0x1e6   :  { %v1095_v17 = vpack.c.bf16 %v637_v10, %v635_v15 }
 0x1e8   :  { %v553_v18 = vpop.f32.mrf.mxu2 }
 0x1e9   :  { %v602_v19 = vpop.f32.mrf.mxu3 }
 0x1ea   :  { %v603_v5 = vadd.f32 %v602_v19, %v1073_v6 }
 0x1ec   :  { %v639_v10 = vmax.f32 %v603_v5, 0.0 }
 0x1f0   :  { %v555_v22 = vpop.f32.mrf.mxu2 }
 0x1f1   :  { %v604_v23 = vpop.f32.mrf.mxu3 }
 0x1f2   :  { %v605_v20 = vadd.f32 %v604_v23, %v1079_v13 }
 0x1f4   :  { %v641_v12 = vmax.f32 %v605_v20, 0.0 }
 0x1f8   :  { %v558_v24 = vpop.f32.mrf.mxu2 }
 0x1f9   :  { %v607_v25 = vpop.f32.mrf.mxu3 }
 0x200   :  { %v560_v28 = vpop.f32.mrf.mxu2 }
 0x201   :  { %v609_v8 = vpop.f32.mrf.mxu3 }
 0x202   :  { %v610_v61 = vadd.f32 %v609_v8, %v1068_v3 }
 0x204   :  { %v645_v21 = vmax.f32 %v610_v61, 0.0 }
 0x208   :  { %v563_v29 = vpop.f32.mrf.mxu2 }
 0x209   :  { %v612_v31 = vpop.f32.mrf.mxu3  ;;  %v564_v42 = vadd.f32 %v563_v29, %v1064_v1 }
 0x20a   :  { %v613_v50 = vadd.f32 %v612_v31, %v1064_v1  ;;  %v556_v1 = vadd.f32 %v555_v22, %v1079_v13  ;;  %v663_v13 = vpack.c.bf16 %v641_v12, %v639_v10 }
 0x20b   :  { %v646_v60 = vmax.f32 %v564_v42, 0.0 }
 0x20c   :  { %v647_v4 = vmax.f32 %v613_v50, 0.0  ;;  %v640_v59 = vmax.f32 %v556_v1, 0.0 }
 0x210   :  { %v565_v32 = vpop.f32.mrf.mxu2 }
 0x211   :  { %v614_v54 = vpop.f32.mrf.mxu3  ;;  %v566_v37 = vadd.f32 %v565_v32, %v1066_v2 }
 0x212   :  { %v615_v47 = vadd.f32 %v614_v54, %v1066_v2  ;;  %v559_v2 = vadd.f32 %v558_v24, %v1077_v9 }
 0x213   :  { %v648_v57 = vmax.f32 %v566_v37, 0.0 }
 0x214   :  { %v649_v62 = vmax.f32 %v615_v47, 0.0  ;;  %v642_v0 = vmax.f32 %v559_v2, 0.0 }
 0x215   :  { %v666_v26 = vpack.c.bf16 %v648_v57, %v646_v60 }
 0x216   :  { %v667_v27 = vpack.c.bf16 %v649_v62, %v647_v4 }
 0x218   :  { %v568_v33 = vpop.f32.mrf.mxu2 }
 0x219   :  { %v617_v34 = vpop.f32.mrf.mxu3  ;;  %v569_v35 = vadd.f32 %v568_v33, %v1059_v41 }
 0x21a   :  { %v618_v36 = vadd.f32 %v617_v34, %v1059_v41  ;;  %v561_v41 = vadd.f32 %v560_v28, %v1068_v3  ;;  %v554_v3 = vadd.f32 %v553_v18, %v1073_v6  ;;  %v670_v6 = vld [vmem:[%s1138_s5] sm:$0xf] }
 0x21b   :  { %v650_v43 = vmax.f32 %v569_v35, 0.0 }
 0x21c   :  { %v651_v53 = vmax.f32 %v618_v36, 0.0  ;;  %v644_v58 = vmax.f32 %v561_v41, 0.0  ;;  %v638_v15 = vmax.f32 %v554_v3, 0.0 }
 0x21e   :  { %v662_v22 = vpack.c.bf16 %v640_v59, %v638_v15 }
 0x220   :  { %v570_v52 = vpop.f32.mrf.mxu2 }
 0x221   :  { %v571_v51 = vadd.f32 %v570_v52, %v1075_v7  ;;  %v619_v38 = vpop.f32.mrf.mxu3 }
 0x222   :  { %v620_v39 = vadd.f32 %v619_v38, %v1075_v7  ;;  %v608_v7 = vadd.f32 %v607_v25, %v1077_v9  ;;  %v664_v9 = vpack.c.bf16 %v644_v58, %v642_v0 }
 0x223   :  { %v652_v49 = vmax.f32 %v571_v51, 0.0 }
 0x224   :  { %v653_v56 = vmax.f32 %v620_v39, 0.0  ;;  %v643_v11 = vmax.f32 %v608_v7, 0.0 }
 0x225   :  { %v668_v44 = vpack.c.bf16 %v652_v49, %v650_v43 }
 0x226   :  { %v669_v63 = vpack.c.bf16 %v653_v56, %v651_v53  ;;  %v665_v14 = vpack.c.bf16 %v645_v21, %v643_v11 }
 0x227   :  { %673 = vmatpush.bf16.msrb.mxu0 %v668_v44 }
 0x228   :  { %686 = vmatpush.bf16.msrb.mxu1 %v669_v63 }
 0x22b   :  { %674 = vmatpush.bf16.msrb.mxu0 %v666_v26 }
 0x22c   :  { %687 = vmatpush.bf16.msrb.mxu1 %v667_v27 }
 0x22f   :  { %675 = vmatpush.bf16.msrb.mxu0 %v664_v9 }
 0x230   :  { %688 = vmatpush.bf16.msrb.mxu1 %v665_v14 }
 0x233   :  { %676 = vmatpush.bf16.msrb.mxu0 %v662_v22 }
 0x234   :  { %689 = vmatpush.bf16.msrb.mxu1 %v663_v13 }
 0x237   :  { %677 = vmatpush.bf16.msrb.mxu0 %v1093_v16 }
 0x238   :  { %690 = vmatpush.bf16.msrb.mxu1 %v1095_v17 }
 0x23b   :  { %678 = vmatpush.bf16.msrb.mxu0 %v1089_v55  ;;  %v672_v55 = vstv %s1139_s6 }
 0x23c   :  { %691 = vmatpush.bf16.msrb.mxu1 %v1091_v40 }
 0x23f   :  { %679 = vmatpush.bf16.msrb.mxu0 %v1085_v45 }
 0x240   :  { %692 = vmatpush.bf16.msrb.mxu1 %v1087_v48 }
 0x243   :  { %680 = vmatpush.bf16.msrb.mxu0 %v1081_v30 }
 0x244   :  { %693 = vmatpush.bf16.msrb.mxu1 %v1083_v46 }
 0x246   :  { %681 = vmatmul.bf16.vlgmr.msrb.gmra.mxu0 %v670_v6 }
 0x247   :  { %694 = vmatmul.bf16.vlgmr.msrb.gmra.mxu1 %v670_v6 }
 0x2c3   :  { %v682_v16 = vpop.f32.mrf.mxu0 }
 0x2c4   :  { %v683_v40 = vadd.f32 %v682_v16, %v672_v55  ;;  %v695_v17 = vpop.f32.mrf.mxu1 }
 0x2c5   :  { %v696_v45 = vadd.f32 %v695_v17, %v672_v55 }
 0x2c6   :  { %699 = vst [vmem:[%s1140_s7] sm:$0xff] %v683_v40 }
 0x2c7   :  { %700 = vst [vmem:[%s1140_s7 + $0x8] sm:$0xff] %v696_v45 }
 0x2cb   :  { %v684_v30 = vpop.f32.mrf.mxu0 }
 0x2cc   :  { %v697_v46 = vpop.f32.mrf.mxu1 }

</bundles_post_ra>
